<compile_context>
chip_gen: v7x
topology: tpu7x:2x2x1
jax: 0.10.0
libtpu: 0.0.40
codegen_flags: <defaults>
</compile_context>

<pallas_src>
import functools
import math

import jax
import jax.numpy as jnp
from jax.experimental import pallas as pl
from jax.experimental.pallas import tpu as pltpu

EPS = 1e-5            # nn.BatchNorm1d default eps
NEG_SLOPE = 0.2       # LeakyReLU negative slope (act_args)
LANE = 128            # TPU lane width
_MiB = 1024 * 1024
VMEM_CEILING_BYTES = 64 * _MiB   # v7x per-TensorCore VMEM (smallest across v5e/v6e/v7x)


def _round_up(n, m):
    return ((n + m - 1) // m) * m


# ---------------------------------------------------------------------------
# Fused kernel: whole MLP in one kernel body
# ---------------------------------------------------------------------------
def _make_fused_kernel(num_hidden, batch):
    inv_b = 1.0 / float(batch)

    def kernel(*refs):
        # refs layout: x, (w_i, gb_i) * num_hidden, final_w, final_b, out
        x_ref = refs[0]
        o_ref = refs[-1]
        pr = refs[1:-1]

        h = x_ref[...].astype(jnp.float32)
        for i in range(num_hidden):
            w_ref = pr[2 * i]          # (Din_p, Dout_p) bf16 weights
            gb_ref = pr[2 * i + 1]     # (2, Dout_p) f32: row0=gamma, row1=beta

            # Linear -- hidden-layer bias omitted: it is exactly cancelled by the
            # BN batch-mean subtraction below.  bf16 MXU inputs, f32 accumulation.
            y = jnp.dot(h.astype(jnp.bfloat16), w_ref[...],
                        preferred_element_type=jnp.float32)

            # BatchNorm1d (training-mode batch stats), centered two-pass variance,
            # affine folded into a single (1, Dout) scale row.
            mean = jnp.sum(y, axis=0, keepdims=True) * inv_b
            yc = y - mean
            var = jnp.sum(yc * yc, axis=0, keepdims=True) * inv_b
            scale = gb_ref[0:1, :] * jax.lax.rsqrt(var + EPS)   # gamma * rsqrt(var+eps)
            z = yc * scale + gb_ref[1:2, :]                     # ... + beta

            # LeakyReLU(0.2)
            h = jnp.where(z >= 0.0, z, NEG_SLOPE * z)

        fw_ref = pr[2 * num_hidden]    # (Din_p, Dout_p) bf16
        fb_ref = pr[2 * num_hidden + 1]  # (1, Dout_p) f32
        y = jnp.dot(h.astype(jnp.bfloat16), fw_ref[...],
                    preferred_element_type=jnp.float32) + fb_ref[...]
        o_ref[...] = jax.nn.sigmoid(y)

    return kernel


# ---------------------------------------------------------------------------
# Parameter construction (PyTorch-default-like init) + lane-dense packing
# ---------------------------------------------------------------------------
def init_generator_params(key, hidden_dims, latent_dim, ambient_dim):
    """Unpadded f32 params, mimicking nn.Linear default init and BatchNorm1d defaults."""
    ws, bs = [], []
    d_in = latent_dim
    for d_out in list(hidden_dims) + [ambient_dim]:
        key, kw, kb = jax.random.split(key, 3)
        bound = 1.0 / math.sqrt(d_in)
        ws.append(jax.random.uniform(kw, (d_in, d_out), jnp.float32, -bound, bound))
        bs.append(jax.random.uniform(kb, (1, d_out), jnp.float32, -bound, bound))
        d_in = d_out
    gammas = [jnp.ones((1, d), jnp.float32) for d in hidden_dims]
    betas = [jnp.zeros((1, d), jnp.float32) for d in hidden_dims]
    return {"w": ws, "b": bs, "gamma": gammas, "beta": betas}


def pack_generator_params(params):
    """Zero-pad feature axes to multiples of 128 lanes, cast weights to bf16, and pack
    (gamma, beta) into one (2, Dout_pad) f32 array per hidden layer.  Hidden-layer
    Linear biases are dropped (exactly cancelled by BN's batch-mean subtraction)."""
    ws, bs, gammas, betas = params["w"], params["b"], params["gamma"], params["beta"]
    n_hidden = len(gammas)
    hw, hgb = [], []
    for i in range(n_hidden):
        w, g, bt = ws[i], gammas[i], betas[i]
        din, dout = w.shape
        din_p = din if i == 0 else _round_up(din, LANE)   # input x stays unpadded
        dout_p = _round_up(dout, LANE)
        wp = jnp.zeros((din_p, dout_p), jnp.float32).at[:din, :dout].set(w)
        hw.append(wp.astype(jnp.bfloat16))
        gb = (jnp.zeros((2, dout_p), jnp.float32)
              .at[0, :dout].set(g[0])
              .at[1, :dout].set(bt[0]))
        hgb.append(gb)
    # final linear (bias kept)
    w, b = ws[-1], bs[-1]
    din, dout = w.shape
    din_p = _round_up(din, LANE)
    dout_p = _round_up(dout, LANE)
    fw = (jnp.zeros((din_p, dout_p), jnp.float32)
          .at[:din, :dout].set(w)).astype(jnp.bfloat16)
    fb = jnp.zeros((1, dout_p), jnp.float32).at[0, :dout].set(b[0])
    return {"hw": hw, "hgb": hgb, "fw": fw, "fb": fb}


# ---------------------------------------------------------------------------
# Forward
# ---------------------------------------------------------------------------
def _vmem_bytes_needed(arg_arrays, batch, max_dp):
    io_bytes = sum(int(a.size) * a.dtype.itemsize for a in arg_arrays)
    io_bytes += batch * max_dp * 4                 # output block (f32)
    temps = 6 * batch * max_dp * 4                 # activation-sized compiler temps
    return io_bytes + temps + 2 * _MiB             # slack


@functools.partial(jax.jit, static_argnames=("latent_dim",))
def generator_forward(packed, x, latent_dim):
    """Whole generator in one fused pallas_call.  Returns the lane-padded
    (B, Dout_pad) output; slice [:, :ambient_dim] lazily at the consumer
    (padded lanes hold sigmoid(0) = 0.5)."""
    # forward: sample = self.model(input.view(-1, self.latent_dim))
    h = x.reshape(-1, latent_dim).astype(jnp.float32)
    B = h.shape[0]
    n_hidden = len(packed["hgb"])

    args = [h]
    for i in range(n_hidden):
        args += [packed["hw"][i], packed["hgb"][i]]
    args += [packed["fw"], packed["fb"]]

    dout_p = packed["fw"].shape[1]
    max_dp = max([a.shape[-1] for a in args[1:]] + [latent_dim])

    need = _vmem_bytes_needed(args, B, max_dp)
    if need > VMEM_CEILING_BYTES:
        # TODO(synk): batch-tiled grid with two-pass BN stats for batches beyond the
        # whole-network-in-VMEM ceiling (v7x has only 64 MiB VMEM per TensorCore).
        raise ValueError(
            f"Batch {B} exceeds the single-shot VMEM ceiling "
            f"({need} > {VMEM_CEILING_BYTES} bytes): tile the batch outside the kernel."
        )
    vmem_limit = int(min(VMEM_CEILING_BYTES, max(16 * _MiB, 2 * need)))

    vmem_spec = pl.BlockSpec(memory_space=pltpu.MemorySpace.VMEM)
    out = pl.pallas_call(
        _make_fused_kernel(n_hidden, B),
        out_shape=jax.ShapeDtypeStruct((B, dout_p), jnp.float32),
        in_specs=[vmem_spec] * len(args),
        out_specs=vmem_spec,
        compiler_params=pltpu.CompilerParams(vmem_limit_bytes=vmem_limit),
    )(*args)
    return out


# ---------------------------------------------------------------------------
# Pure-JAX references (use unpadded params; faithful module math incl. hidden bias)
# ---------------------------------------------------------------------------
def _reference_forward(params, x, latent_dim, matmul_dtype=jnp.float32):
    h = x.reshape(-1, latent_dim).astype(jnp.float32)
    n_hidden = len(params["gamma"])
    for i in range(n_hidden):
        w, b = params["w"][i], params["b"][i]
        g, bt = params["gamma"][i], params["beta"][i]
        y = jnp.dot(h.astype(matmul_dtype), w.astype(matmul_dtype),
                    preferred_element_type=jnp.float32) + b
        mean = jnp.mean(y, axis=0, keepdims=True)
        var = jnp.mean((y - mean) ** 2, axis=0, keepdims=True)
        z = g * (y - mean) / jnp.sqrt(var + EPS) + bt
        h = jnp.where(z >= 0.0, z, NEG_SLOPE * z)
    w, b = params["w"][-1], params["b"][-1]
    y = jnp.dot(h.astype(matmul_dtype), w.astype(matmul_dtype),
                preferred_element_type=jnp.float32) + b
    return jax.nn.sigmoid(y)


if __name__ == "__main__":
    # Small shapes consistent with the module.
    hidden_dims = [32, 32]
    latent_dim = 16
    ambient_dim = 64
    batch = 8

    key = jax.random.PRNGKey(0)
    key_p, key_x = jax.random.split(key)
    params = init_generator_params(key_p, hidden_dims, latent_dim, ambient_dim)
    packed = pack_generator_params(params)
    # input can be any shape that flattens to (-1, latent_dim)
    x = jax.random.normal(key_x, (batch, latent_dim), jnp.float32)

    out_padded = generator_forward(packed, x, latent_dim)
    out_padded = jax.block_until_ready(out_padded)
    assert out_padded.shape == (batch, 128)
    out = out_padded[:, :ambient_dim]       # lazy slice at the consumer

    # (1) Tight check vs a reference using the same bf16-quantized matmul inputs
    #     (validates BN folding, bias cancellation, LeakyReLU, sigmoid).
    ref_bf16 = _reference_forward(params, x, latent_dim, matmul_dtype=jnp.bfloat16)
    assert jnp.allclose(out, ref_bf16, atol=1e-3, rtol=1e-3), \
        "Pallas output mismatch vs bf16-matched reference"

    # (2) Sanity check vs the full-f32 module semantics (bf16 weight quantization is
    #     the only deviation; BN renormalization keeps its effect small).
    ref_f32 = _reference_forward(params, x, latent_dim, matmul_dtype=jnp.float32)
    assert jnp.allclose(out, ref_f32, atol=3e-2, rtol=0.0), \
        "Pallas output drifted too far from f32 module semantics"

    print("KERNEL_OK")
</pallas_src>

<mosaic_0001>
module attributes {stable_mosaic.version = 11 : i64} {
  func.func @kernel(%arg0: memref<8x16xf32, #tpu.memory_space<vmem>>, %arg1: memref<16x128xbf16, #tpu.memory_space<vmem>>, %arg2: memref<2x128xf32, #tpu.memory_space<vmem>>, %arg3: memref<128x128xbf16, #tpu.memory_space<vmem>>, %arg4: memref<2x128xf32, #tpu.memory_space<vmem>>, %arg5: memref<128x128xbf16, #tpu.memory_space<vmem>>, %arg6: memref<1x128xf32, #tpu.memory_space<vmem>>, %arg7: memref<8x128xf32, #tpu.memory_space<vmem>>) attributes {dimension_semantics = [], scalar_prefetch = 0 : i64, scratch_operands = 0 : i64, tpu.core_type = #tpu.core_type<tc>} {
    %c0 = arith.constant 0 : index
    %c0_0 = arith.constant 0 : index
    %0 = vector.load %arg0[%c0, %c0_0] : memref<8x16xf32, #tpu.memory_space<vmem>>, vector<8x16xf32>
    %1 = arith.truncf %0 : vector<8x16xf32> to vector<8x16xbf16>
    %c0_1 = arith.constant 0 : index
    %c0_2 = arith.constant 0 : index
    %2 = vector.load %arg1[%c0_1, %c0_2] : memref<16x128xbf16, #tpu.memory_space<vmem>>, vector<16x128xbf16>
    %cst = arith.constant dense<0.000000e+00> : vector<8x128xf32>
    %3 = tpu.matmul %1, %2, %cst {dimension_numbers = #tpu.dot_dimension_numbers<[1], [0], [0], [1], [0, 0, 1, 1], [], []>} : vector<8x16xbf16>, vector<16x128xbf16>, vector<8x128xf32> -> vector<8x128xf32>
    %cst_3 = arith.constant dense<0.000000e+00> : vector<128xf32>
    %4 = vector.multi_reduction <add>, %3, %cst_3 [0] : vector<8x128xf32> to vector<128xf32>
    %5 = vector.shape_cast %4 : vector<128xf32> to vector<1x128xf32>
    %cst_4 = arith.constant 1.250000e-01 : f32
    %6 = vector.broadcast %cst_4 : f32 to vector<1x128xf32>
    %7 = arith.mulf %5, %6 : vector<1x128xf32>
    %8 = vector.broadcast %7 : vector<1x128xf32> to vector<8x128xf32>
    %9 = arith.subf %3, %8 : vector<8x128xf32>
    %10 = arith.mulf %9, %9 : vector<8x128xf32>
    %cst_5 = arith.constant dense<0.000000e+00> : vector<128xf32>
    %11 = vector.multi_reduction <add>, %10, %cst_5 [0] : vector<8x128xf32> to vector<128xf32>
    %12 = vector.shape_cast %11 : vector<128xf32> to vector<1x128xf32>
    %cst_6 = arith.constant 1.250000e-01 : f32
    %13 = vector.broadcast %cst_6 : f32 to vector<1x128xf32>
    %14 = arith.mulf %12, %13 : vector<1x128xf32>
    %c0_7 = arith.constant 0 : index
    %c0_8 = arith.constant 0 : index
    %15 = vector.load %arg2[%c0_7, %c0_8] : memref<2x128xf32, #tpu.memory_space<vmem>>, vector<1x128xf32>
    %cst_9 = arith.constant 9.99999974E-6 : f32
    %16 = vector.broadcast %cst_9 : f32 to vector<1x128xf32>
    %17 = arith.addf %14, %16 : vector<1x128xf32>
    %18 = math.rsqrt %17 : vector<1x128xf32>
    %19 = arith.mulf %15, %18 : vector<1x128xf32>
    %20 = vector.broadcast %19 : vector<1x128xf32> to vector<8x128xf32>
    %21 = arith.mulf %9, %20 : vector<8x128xf32>
    %c1 = arith.constant 1 : index
    %c0_10 = arith.constant 0 : index
    %22 = vector.load %arg2[%c1, %c0_10] : memref<2x128xf32, #tpu.memory_space<vmem>>, vector<1x128xf32>
    %23 = vector.broadcast %22 : vector<1x128xf32> to vector<8x128xf32>
    %24 = arith.addf %21, %23 : vector<8x128xf32>
    %cst_11 = arith.constant 0.000000e+00 : f32
    %25 = vector.broadcast %cst_11 : f32 to vector<8x128xf32>
    %26 = arith.cmpf oge, %24, %25 : vector<8x128xf32>
    %cst_12 = arith.constant 2.000000e-01 : f32
    %27 = vector.broadcast %cst_12 : f32 to vector<8x128xf32>
    %28 = arith.mulf %27, %24 : vector<8x128xf32>
    %29 = arith.select %26, %24, %28 : vector<8x128xi1>, vector<8x128xf32>
    %30 = arith.truncf %29 : vector<8x128xf32> to vector<8x128xbf16>
    %c0_13 = arith.constant 0 : index
    %c0_14 = arith.constant 0 : index
    %31 = vector.load %arg3[%c0_13, %c0_14] : memref<128x128xbf16, #tpu.memory_space<vmem>>, vector<128x128xbf16>
    %cst_15 = arith.constant dense<0.000000e+00> : vector<8x128xf32>
    %32 = tpu.matmul %30, %31, %cst_15 {dimension_numbers = #tpu.dot_dimension_numbers<[1], [0], [0], [1], [0, 0, 1, 1], [], []>} : vector<8x128xbf16>, vector<128x128xbf16>, vector<8x128xf32> -> vector<8x128xf32>
    %cst_16 = arith.constant dense<0.000000e+00> : vector<128xf32>
    %33 = vector.multi_reduction <add>, %32, %cst_16 [0] : vector<8x128xf32> to vector<128xf32>
    %34 = vector.shape_cast %33 : vector<128xf32> to vector<1x128xf32>
    %cst_17 = arith.constant 1.250000e-01 : f32
    %35 = vector.broadcast %cst_17 : f32 to vector<1x128xf32>
    %36 = arith.mulf %34, %35 : vector<1x128xf32>
    %37 = vector.broadcast %36 : vector<1x128xf32> to vector<8x128xf32>
    %38 = arith.subf %32, %37 : vector<8x128xf32>
    %39 = arith.mulf %38, %38 : vector<8x128xf32>
    %cst_18 = arith.constant dense<0.000000e+00> : vector<128xf32>
    %40 = vector.multi_reduction <add>, %39, %cst_18 [0] : vector<8x128xf32> to vector<128xf32>
    %41 = vector.shape_cast %40 : vector<128xf32> to vector<1x128xf32>
    %cst_19 = arith.constant 1.250000e-01 : f32
    %42 = vector.broadcast %cst_19 : f32 to vector<1x128xf32>
    %43 = arith.mulf %41, %42 : vector<1x128xf32>
    %c0_20 = arith.constant 0 : index
    %c0_21 = arith.constant 0 : index
    %44 = vector.load %arg4[%c0_20, %c0_21] : memref<2x128xf32, #tpu.memory_space<vmem>>, vector<1x128xf32>
    %cst_22 = arith.constant 9.99999974E-6 : f32
    %45 = vector.broadcast %cst_22 : f32 to vector<1x128xf32>
    %46 = arith.addf %43, %45 : vector<1x128xf32>
    %47 = math.rsqrt %46 : vector<1x128xf32>
    %48 = arith.mulf %44, %47 : vector<1x128xf32>
    %49 = vector.broadcast %48 : vector<1x128xf32> to vector<8x128xf32>
    %50 = arith.mulf %38, %49 : vector<8x128xf32>
    %c1_23 = arith.constant 1 : index
    %c0_24 = arith.constant 0 : index
    %51 = vector.load %arg4[%c1_23, %c0_24] : memref<2x128xf32, #tpu.memory_space<vmem>>, vector<1x128xf32>
    %52 = vector.broadcast %51 : vector<1x128xf32> to vector<8x128xf32>
    %53 = arith.addf %50, %52 : vector<8x128xf32>
    %cst_25 = arith.constant 0.000000e+00 : f32
    %54 = vector.broadcast %cst_25 : f32 to vector<8x128xf32>
    %55 = arith.cmpf oge, %53, %54 : vector<8x128xf32>
    %cst_26 = arith.constant 2.000000e-01 : f32
    %56 = vector.broadcast %cst_26 : f32 to vector<8x128xf32>
    %57 = arith.mulf %56, %53 : vector<8x128xf32>
    %58 = arith.select %55, %53, %57 : vector<8x128xi1>, vector<8x128xf32>
    %59 = arith.truncf %58 : vector<8x128xf32> to vector<8x128xbf16>
    %c0_27 = arith.constant 0 : index
    %c0_28 = arith.constant 0 : index
    %60 = vector.load %arg5[%c0_27, %c0_28] : memref<128x128xbf16, #tpu.memory_space<vmem>>, vector<128x128xbf16>
    %cst_29 = arith.constant dense<0.000000e+00> : vector<8x128xf32>
    %61 = tpu.matmul %59, %60, %cst_29 {dimension_numbers = #tpu.dot_dimension_numbers<[1], [0], [0], [1], [0, 0, 1, 1], [], []>} : vector<8x128xbf16>, vector<128x128xbf16>, vector<8x128xf32> -> vector<8x128xf32>
    %c0_30 = arith.constant 0 : index
    %c0_31 = arith.constant 0 : index
    %62 = vector.load %arg6[%c0_30, %c0_31] : memref<1x128xf32, #tpu.memory_space<vmem>>, vector<1x128xf32>
    %63 = vector.broadcast %62 : vector<1x128xf32> to vector<8x128xf32>
    %64 = arith.addf %61, %63 : vector<8x128xf32>
    %65 = arith.negf %64 : vector<8x128xf32>
    %66 = math.exp %65 : vector<8x128xf32>
    %cst_32 = arith.constant 1.000000e+00 : f32
    %67 = vector.broadcast %cst_32 : f32 to vector<8x128xf32>
    %68 = arith.addf %67, %66 : vector<8x128xf32>
    %69 = arith.divf %67, %68 : vector<8x128xf32>
    %c0_33 = arith.constant 0 : index
    %c0_34 = arith.constant 0 : index
    %70 = vector.load %arg7[%c0_33, %c0_34] : memref<8x128xf32, #tpu.memory_space<vmem>>, vector<8x128xf32>
    tpu.vector_store %arg7[%c0_33, %c0_34], %69 {strides = array<i32>} : memref<8x128xf32, #tpu.memory_space<vmem>>, vector<8x128xf32>,
    return
  }
}

</mosaic_0001>

<bundles_post_ra>
// kernel: generator_forward.1
= control target key start
LH: loop header
LB: loop body
LE: loop exit
PB: predicated region body
PF: predicated region fallthrough
CT: control target
= control target key end

     0   :  { %12 = vsyncpa [#allocation3], 0  ;;  %s847_s0 = inlined_call_operand.vmem [shape: f32[8,16], index: 0, kind: input, shape index: {}]   ;;  %s848_s1 = inlined_call_operand.hbm [shape: bf16[16,128], index: 1, kind: input, shape index: {}]   ;;  %s849_s2 = inlined_call_operand.vmem [shape: f32[2,128], index: 2, kind: input, shape index: {}]   ;;  %s850_s3 = inlined_call_operand.hbm [shape: bf16[128,128], index: 3, kind: input, shape index: {}]   ;;  %s851_s4 = inlined_call_operand.vmem [shape: f32[2,128], index: 4, kind: input, shape index: {}]   ;;  %s852_s5 = inlined_call_operand.hbm [shape: bf16[128,128], index: 5, kind: input, shape index: {}]   ;;  %s853_s6 = inlined_call_operand.hbm [shape: f32[1,128], index: 6, kind: input, shape index: {}]   ;;  %s854_s7 = inlined_call_operand.hbm [shape: f32[8,128], index: 7, kind: output, shape index: {}]  }
   0x1   :  { %13 = vsyncpa [#allocation6], 0 }
   0x2   :  { %14 = vsyncpa [#allocation9], 0 }
   0x3   :  { %15 = vsyncpa [#allocation4], 0  ;;  %s684_s24 = smov [#allocation5]   ;;  %s685_s26 = smov [#allocation2]  }
   0x4   :  { %s37_s25 = sshll.u32 %s684_s24, 4  ;;  %s23_s27 = sshll.u32 %s685_s26, 4  ;;  %s38_s25 = int_to_ptr.vmem [resolvable:$true] %s37_s25  ;;  %s733_s27 = int_to_ptr.vmem [resolvable:$true] %s23_s27 }
   0x5   :  { %s566_s30 = scalar_lea.hbm %s850_s3, 1024 }
   0x6   :  { %p567_p0 = scmp.ne.s32.totalorder %s850_s3, %s566_s30  ;;  %p570_p1 = scmp.lt.u32.totalorder %s566_s30, %s850_s3 }
   0x8   :  { %p572_p2 = pnand %p570_p1, %p567_p0 }
   0xa   :  { %575 = shalt.err (!%p572_p2)
}
   0xb   :  { %s576_s12 = scalar_lea.vmem %s38_s25, 1024  ;;  %p581_p4 = scmp.lt.s32.totalorder %s38_s25, %s38_s25 }
   0xc   :  { %p577_p3 = scmp.ne.s32.totalorder %s38_s25, %s576_s12  ;;  %p582_p5 = scmp.lt.s32.totalorder %s576_s12, %s576_s12 }
   0xe   :  { %p583_p6 = por %p582_p5, %p581_p4 }
  0x10   :  { %p584_p7 = pnand %p583_p6, %p577_p3 }
  0x12   :  { %587 = shalt.err (!%p584_p7)
}
  0x13   :  { %s686_s13 = smov 64   ;;  %s687_s14 = smov 4  }
  0x14   :  { %43 = dma.hbm_to_vmem [thread:$0]  %s850_s3, 1024, %s38_s25, [#allocation6], %s686_s13, %s686_s13, %s687_s14  }
  0x15   :  { %s588_s19 = scalar_lea.hbm %s848_s1, 128 }
  0x16   :  { %p589_p8 = scmp.ne.s32.totalorder %s848_s1, %s588_s19  ;;  %p592_p9 = scmp.lt.u32.totalorder %s588_s19, %s848_s1 }
  0x18   :  { %p594_p10 = pnand %p592_p9, %p589_p8 }
  0x1a   :  { %597 = shalt.err (!%p594_p10)
}
  0x1b   :  { %s598_s24 = scalar_lea.vmem %s733_s27, 128  ;;  %p603_p12 = scmp.lt.s32.totalorder %s733_s27, %s733_s27 }
  0x1c   :  { %p599_p11 = scmp.ne.s32.totalorder %s733_s27, %s598_s24  ;;  %p604_p13 = scmp.lt.s32.totalorder %s598_s24, %s598_s24 }
  0x1e   :  { %p605_p0 = por %p604_p13, %p603_p12 }
  0x20   :  { %p606_p1 = pnand %p605_p0, %p599_p11 }
  0x22   :  { %609 = shalt.err (!%p606_p1)
}
  0x23   :  { %29 = dma.hbm_to_vmem [thread:$0]  %s848_s1, 128, %s733_s27, [#allocation3], %s686_s13, %s686_s13, %s687_s14  }
  0x24   :  { %s688_s26 = smov [#allocation7]   ;;  %s689_s29 = smov [#allocation8]  }
  0x25   :  { %s51_s28 = sshll.u32 %s688_s26, 4  ;;  %s64_s30 = sshll.u32 %s689_s29, 4  ;;  %s52_s28 = int_to_ptr.vmem [resolvable:$true] %s51_s28  ;;  %s65_s30 = int_to_ptr.vmem [resolvable:$true] %s64_s30 }
  0x26   :  { %s610_s10 = scalar_lea.hbm %s852_s5, 1024 }
  0x27   :  { %p611_p2 = scmp.ne.s32.totalorder %s852_s5, %s610_s10  ;;  %p614_p3 = scmp.lt.u32.totalorder %s610_s10, %s852_s5 }
  0x29   :  { %p616_p4 = pnand %p614_p3, %p611_p2 }
  0x2b   :  { %619 = shalt.err (!%p616_p4)
}
  0x2c   :  { %s620_s1 = scalar_lea.vmem %s52_s28, 1024  ;;  %p625_p6 = scmp.lt.s32.totalorder %s52_s28, %s52_s28 }
  0x2d   :  { %p621_p5 = scmp.ne.s32.totalorder %s52_s28, %s620_s1  ;;  %p626_p7 = scmp.lt.s32.totalorder %s620_s1, %s620_s1 }
  0x2f   :  { %p627_p8 = por %p626_p7, %p625_p6 }
  0x31   :  { %p628_p9 = pnand %p627_p8, %p621_p5 }
  0x33   :  { %631 = shalt.err (!%p628_p9)
}
  0x34   :  { %57 = dma.hbm_to_vmem [thread:$0]  %s852_s5, 1024, %s52_s28, [#allocation6], %s686_s13, %s686_s13, %s687_s14  }
  0x35   :  { %s632_s20 = scalar_lea.hbm %s853_s6, 16 }
  0x36   :  { %p633_p10 = scmp.ne.s32.totalorder %s853_s6, %s632_s20  ;;  %p636_p11 = scmp.lt.u32.totalorder %s632_s20, %s853_s6 }
  0x38   :  { %p638_p12 = pnand %p636_p11, %p633_p10 }
  0x3a   :  { %641 = shalt.err (!%p638_p12)
}
  0x3b   :  { %s642_s3 = scalar_lea.vmem %s65_s30, 16  ;;  %s646_s25 = scalar_lea.vmem %s65_s30, 32 }
  0x3c   :  { %p643_p13 = scmp.ne.s32.totalorder %s65_s30, %s642_s3  ;;  %p647_p0 = scmp.lt.s32.totalorder %s65_s30, %s65_s30 }
  0x3d   :  { %p648_p1 = scmp.lt.s32.totalorder %s646_s25, %s642_s3 }
  0x3f   :  { %p649_p2 = por %p648_p1, %p647_p0 }
  0x41   :  { %p650_p3 = pnand %p649_p2, %p643_p13 }
  0x43   :  { %653 = shalt.err (!%p650_p3)
}
  0x44   :  { %67 = dma.hbm_to_vmem [thread:$0]  %s853_s6, 16, %s65_s30, [#allocation9]  }
  0x45   :  { %676 = dma.done.wait [#allocation3], 128  }
  0x46   :  { %677 = vsyncadd [#allocation3], 4294967168 }
  0x47   :  { %678 = dma.done.wait [#allocation6], 2048  }
  0x48   :  { %679 = vsyncadd [#allocation6], 4294965248 }
  0x49   :  { %680 = dma.done.wait [#allocation9], 16  }
  0x4a   :  { %681 = vsyncadd [#allocation9], 4294967280  ;;  %v690_v0 = vmov 0.0   ;;  %vm691_vm0 = vmmov 0   ;;  %v541_v1 = vld [vmem:[#allocation2] sm:$0xff]   ;;  %v81_v2 = vld [vmem:[%s847_s0] sm:$0xff]  ;;  %v155_v33 = vlaneseq }
  0x4b   :  { %486 = vmatprep.subr.bf16.mxu0 %v690_v0  ;;  %488 = vmatprep.mubr.msk.bf16.mxu0 %vm691_vm0, %v690_v0  ;;  %vm91_vm1 = vcmask 130048   ;;  %v82_v3 = vpack.c.bf16 %v81_v2, %v81_v2  ;;  %v542_v4 = vld [vmem:[#allocation5] sm:$0xff]   ;;  %v543_v5 = vld [vmem:[#allocation5 + $0x8] sm:$0xff]   ;;  %v544_v6 = vld [vmem:[#allocation5 + $0x10] sm:$0xff]   ;;  %s692_s10 = smov [#allocation10]  }
  0x4c   :  { %492 = vmatprep.subr.bf16.mxu1 %v690_v0  ;;  %508 = vmatprep.mubr.msk.bf16.mxu1 %vm691_vm0, %v690_v0  ;;  %v545_v7 = vld [vmem:[#allocation5 + $0x18] sm:$0xff]   ;;  %v546_v8 = vld [vmem:[#allocation5 + $0x20] sm:$0xff]   ;;  %v547_v9 = vld [vmem:[#allocation5 + $0x28] sm:$0xff]   ;;  %v813_v34 = vshrl.u32 %v155_v33, 7 }
  0x4d   :  { %487 = vmatpush3.bf16.msra.mxu0 %v541_v1  ;;  %493 = vmatpush3.bf16.msra.mxu1 %v542_v4  ;;  %v548_v10 = vld [vmem:[#allocation5 + $0x30] sm:$0xff]   ;;  %v549_v11 = vld [vmem:[#allocation5 + $0x38] sm:$0xff]   ;;  %v151_v35 = vld [vmem:[%s849_s2] sm:$0x1] }
  0x4e   :  { %512 = vmatprep.subr.bf16.mxu0 %v690_v0  ;;  %494 = vmatprep.subr.bf16.mxu1 %v690_v0  ;;  %v157_v36 = vsub.s32 0, %v813_v34  ;;  %v446_v40 = vld [vmem:[%s849_s2 + $0x1] ss:$0 sm:$0xff]  ;;  %v551_v47 = vld [vmem:[#allocation7 + $0x8] sm:$0xff]   ;;  %v552_v48 = vld [vmem:[#allocation7 + $0x10] sm:$0xff]  }
  0x4f   :  { %v550_v46 = vld [vmem:[#allocation7] sm:$0xff]   ;;  %v553_v49 = vld [vmem:[#allocation7 + $0x18] sm:$0xff]   ;;  %v555_v51 = vld [vmem:[#allocation7 + $0x28] sm:$0xff]  }
  0x50   :  { %489 = vmatmul.mubr.msk.bf16.vlgmr.msra.gmra.mrb[0].mxu0 %vm91_vm1, %v82_v3  ;;  %v554_v50 = vld [vmem:[#allocation7 + $0x20] sm:$0xff]   ;;  %v556_v52 = vld [vmem:[#allocation7 + $0x30] sm:$0xff]   ;;  %v557_v53 = vld [vmem:[#allocation7 + $0x38] sm:$0xff]  }
  0x51   :  { %528 = vmatprep.mubr.msk.bf16.mxu0 %vm691_vm0, %v690_v0  ;;  %495 = vmatpush3.bf16.msra.mxu1 %v543_v5 }
  0x52   :  { %496 = vmatprep.subr.bf16.mxu1 %v690_v0  ;;  %513 = vmatpush3.bf16.msra.mxu0 %v550_v46 }
  0x53   :  { %514 = vmatprep.subr.bf16.mxu0 %v690_v0 }
  0x55   :  { %497 = vmatpush3.bf16.msra.mxu1 %v544_v6 }
  0x56   :  { %498 = vmatprep.subr.bf16.mxu1 %v690_v0  ;;  %515 = vmatpush3.bf16.msra.mxu0 %v551_v47 }
  0x57   :  { %516 = vmatprep.subr.bf16.mxu0 %v690_v0 }
  0x59   :  { %499 = vmatpush3.bf16.msra.mxu1 %v545_v7 }
  0x5a   :  { %500 = vmatprep.subr.bf16.mxu1 %v690_v0  ;;  %517 = vmatpush3.bf16.msra.mxu0 %v552_v48 }
  0x5b   :  { %518 = vmatprep.subr.bf16.mxu0 %v690_v0 }
  0x5d   :  { %501 = vmatpush3.bf16.msra.mxu1 %v546_v8 }
  0x5e   :  { %502 = vmatprep.subr.bf16.mxu1 %v690_v0  ;;  %519 = vmatpush3.bf16.msra.mxu0 %v553_v49 }
  0x5f   :  { %520 = vmatprep.subr.bf16.mxu0 %v690_v0 }
  0x61   :  { %503 = vmatpush3.bf16.msra.mxu1 %v547_v9 }
  0x62   :  { %504 = vmatprep.subr.bf16.mxu1 %v690_v0  ;;  %521 = vmatpush3.bf16.msra.mxu0 %v554_v50 }
  0x63   :  { %522 = vmatprep.subr.bf16.mxu0 %v690_v0 }
  0x65   :  { %505 = vmatpush3.bf16.msra.mxu1 %v548_v10 }
  0x66   :  { %506 = vmatprep.subr.bf16.mxu1 %v690_v0  ;;  %523 = vmatpush3.bf16.msra.mxu0 %v555_v51 }
  0x67   :  { %524 = vmatprep.subr.bf16.mxu0 %v690_v0 }
  0x69   :  { %507 = vmatpush3.bf16.msra.mxu1 %v549_v11  ;;  %v290_v11 = vld [vmem:[%s851_s4] sm:$0x1] }
  0x6a   :  { %525 = vmatpush3.bf16.msra.mxu0 %v556_v52 }
  0x6b   :  { %526 = vmatprep.subr.bf16.mxu0 %v690_v0 }
  0x6e   :  { %527 = vmatpush3.bf16.msra.mxu0 %v557_v53 }
 0x123   :  { %v129_v12 = vpop.f32.mrb[0].mxu0 }
 0x124   :  { %v135_v13 = vrot.slane %v129_v12, 4  ;;  %v490_v14 = vpop.f32.mrb[1].mxu0 }
 0x125   :  { %v132_v15 = vpop.f32.mrb[2].mxu0 }
 0x126   :  { %v136_v16 = vadd.f32 %v135_v13, %v129_v12  ;;  %v491_v17 = vpop.f32.mrb[3].mxu0  ;;  %v455_v15 = vld [vmem:[%s851_s4 + $0x1] ss:$0 sm:$0xff]  ;;  %s433_s4 = sshll.u32 %s692_s10, 4  ;;  %s434_s4 = int_to_ptr.vmem [resolvable:$true] %s433_s4 }
 0x127   :  { %s654_s11 = scalar_lea.vmem %s434_s4, 128  ;;  %p659_p5 = scmp.lt.s32.totalorder %s434_s4, %s434_s4 }
 0x128   :  { %v137_v18 = vrot.slane %v136_v16, 2  ;;  %p655_p4 = scmp.ne.s32.totalorder %s434_s4, %s654_s11  ;;  %p660_p6 = scmp.lt.s32.totalorder %s654_s11, %s654_s11 }
 0x12a   :  { %v138_v19 = vadd.f32 %v137_v18, %v136_v16  ;;  %p661_p7 = por %p660_p6, %p659_p5 }
 0x12c   :  { %v139_v20 = vrot.slane %v138_v19, 1  ;;  %p662_p8 = pnand %p661_p7, %p655_p4 }
 0x12e   :  { %v140_v21 = vadd.f32 %v139_v20, %v138_v19 }
 0x130   :  { %v141_v22 = vmul.f32 0.125, %v140_v21  ;;  %v456_v21 = vld [vmem:[#allocation8] ss:$0 sm:$0xff] }
 0x132   :  { %v142_v23 = vsub.f32 %v129_v12, %v141_v22 }
 0x134   :  { %v143_v24 = vmul.f32 %v142_v23, %v142_v23 }
 0x136   :  { %v144_v25 = vrot.slane %v143_v24, 4 }
 0x138   :  { %v145_v26 = vadd.f32 %v144_v25, %v143_v24 }
 0x13a   :  { %v146_v27 = vrot.slane %v145_v26, 2 }
 0x13c   :  { %v147_v28 = vadd.f32 %v146_v27, %v145_v26 }
 0x13e   :  { %v148_v29 = vrot.slane %v147_v28, 1 }
 0x140   :  { %v149_v30 = vadd.f32 %v148_v29, %v147_v28 }
 0x142   :  { %v150_v31 = vmul.f32 0.125, %v149_v30 }
 0x144   :  { %v152_v32 = vadd.f32 1e-05, %v150_v31 }
 0x146   :  { %558 = vrsqrt.f32 %v152_v32 }
 0x150   :  { %v559_v37 = vpop.eup %558 }
 0x151   :  { %v154_v38 = vmul.f32 %v559_v37, %v151_v35 }
 0x153   :  { %v158_v39 = vrot.slane %v154_v38, %v157_v36 }
 0x155   :  { %v159_v41 = vmul.f32 %v158_v39, %v142_v23 }
 0x157   :  { %v165_v42 = vadd.f32 %v446_v40, %v159_v41 }
 0x159   :  { %vm166_vm2 = vcmp.ge.f32.partialorder %v165_v42, 0.0  ;;  %v167_v43 = vmul.f32 0.2, %v165_v42 }
 0x15b   :  { %v168_v44 = vsel %vm166_vm2, %v165_v42, %v167_v43 }
 0x15c   :  { %v169_v45 = vpack.c.bf16 %v168_v44, %v168_v44 }
 0x15e   :  { %509 = vmatmul.mubr.bf16.vlgmr.msra.gmra.mrb[0].mxu1 %v169_v45 }
 0x231   :  { %v268_v54 = vpop.f32.mrb[0].mxu1 }
 0x232   :  { %v274_v55 = vrot.slane %v268_v54, 4  ;;  %v510_v56 = vpop.f32.mrb[1].mxu1 }
 0x233   :  { %v271_v57 = vpop.f32.mrb[2].mxu1 }
 0x234   :  { %v275_v58 = vadd.f32 %v274_v55, %v268_v54  ;;  %v511_v59 = vpop.f32.mrb[3].mxu1 }
 0x236   :  { %v276_v60 = vrot.slane %v275_v58, 2 }
 0x238   :  { %v277_v61 = vadd.f32 %v276_v60, %v275_v58 }
 0x23a   :  { %v278_v62 = vrot.slane %v277_v61, 1 }
 0x23c   :  { %v279_v63 = vadd.f32 %v278_v62, %v277_v61 }
 0x23e   :  { %v280_v1 = vmul.f32 0.125, %v279_v63 }
 0x240   :  { %v281_v2 = vsub.f32 %v268_v54, %v280_v1 }
 0x242   :  { %v282_v3 = vmul.f32 %v281_v2, %v281_v2 }
 0x244   :  { %v283_v4 = vrot.slane %v282_v3, 4 }
 0x246   :  { %v284_v5 = vadd.f32 %v283_v4, %v282_v3 }
 0x248   :  { %v285_v6 = vrot.slane %v284_v5, 2 }
 0x24a   :  { %v286_v7 = vadd.f32 %v285_v6, %v284_v5 }
 0x24c   :  { %v287_v0 = vrot.slane %v286_v7, 1 }
 0x24e   :  { %v288_v8 = vadd.f32 %v287_v0, %v286_v7 }
 0x250   :  { %v289_v9 = vmul.f32 0.125, %v288_v8 }
 0x252   :  { %v291_v10 = vadd.f32 1e-05, %v289_v9 }
 0x254   :  { %560 = vrsqrt.f32 %v291_v10 }
 0x25e   :  { %v561_v12 = vpop.eup %560 }
 0x25f   :  { %v293_v13 = vmul.f32 %v561_v12, %v290_v11 }
 0x261   :  { %v297_v14 = vrot.slane %v293_v13, %v157_v36 }
 0x263   :  { %v298_v16 = vmul.f32 %v297_v14, %v281_v2 }
 0x265   :  { %v304_v17 = vadd.f32 %v455_v15, %v298_v16 }
 0x267   :  { %v306_v18 = vmul.f32 0.2, %v304_v17  ;;  %vm305_vm3 = vcmp.ge.f32.partialorder %v304_v17, 0.0 }
 0x269   :  { %v307_v19 = vsel %vm305_vm3, %v304_v17, %v306_v18 }
 0x26a   :  { %v308_v20 = vpack.c.bf16 %v307_v19, %v307_v19 }
 0x26c   :  { %529 = vmatmul.mubr.bf16.vlgmr.msra.gmra.mrb[4].mxu0 %v308_v20 }
 0x33f   :  { %v414_v22 = vpop.f32.mrb[4].mxu0 }
 0x340   :  { %v415_v23 = vadd.f32 %v456_v21, %v414_v22  ;;  %v530_v24 = vpop.f32.mrb[5].mxu0 }
 0x341   :  { %v417_v25 = vpop.f32.mrb[6].mxu0 }
 0x342   :  { %v465_v26 = vmul.f32 -1.442695, %v415_v23  ;;  %v531_v27 = vpop.f32.mrb[7].mxu0 }
 0x344   :  { %562 = vpow2.f32 %v465_v26 }
 0x34e   :  { %v563_v28 = vpop.eup %562 }
 0x34f   :  { %v423_v29 = vadd.f32 1.0, %v563_v28 }
 0x351   :  { %564 = vrcp.f32 %v423_v29 }
 0x35b   :  { %v565_v30 = vpop.eup %564 }
 0x35c   :  { %426 = vst [vmem:[#allocation10] sm:$0xff] %v565_v30 }
 0x35d   :  { %665 = shalt.err (!%p662_p8)
}
 0x35e   :  { %s666_s16 = scalar_lea.hbm %s854_s7, 128 }
 0x35f   :  { %p667_p9 = scmp.ne.s32.totalorder %s854_s7, %s666_s16  ;;  %p670_p10 = scmp.lt.u32.totalorder %s666_s16, %s854_s7 }
 0x361   :  { %p672_p11 = pnand %p670_p10, %p667_p9 }
 0x363   :  { %675 = shalt.err (!%p672_p11)
}
 0x364   :  { %436 = dma.vmem_to_hbm [thread:$0]  %s434_s4, 128, %s854_s7, [#allocation4]  }
 0x365   :  { %682 = dma.done.wait [#allocation4], 128  }
 0x366   :  { %683 = vsyncadd [#allocation4], 4294967168 }
 0x367   :  { %440 = vsyncpa [#allocation3], 1 }
 0x368   :  { %441 = vsyncpa [#allocation6], 1 }
 0x369   :  { %442 = vsyncpa [#allocation9], 1 }
 0x36a   :  { %443 = vsyncpa [#allocation4], 1 }

</bundles_post_ra>
